<compile_context>
chip_gen: v5e
topology: v5e:2x2
jax: 0.10.0
libtpu: 0.0.40
codegen_flags: <defaults>
</compile_context>

<pallas_src>
import functools

import jax
import jax.numpy as jnp
from jax.experimental import pallas as pl
from jax.experimental.pallas import tpu as pltpu


def _round_up(n, m):
    return ((n + m - 1) // m) * m


def _tpu_memory_budget():
    """(max_tile_bytes, vmem_limit_bytes), generation-aware with a safe default."""
    vmem_bytes = None
    try:
        if hasattr(pltpu, "get_tpu_info"):
            vmem_bytes = pltpu.get_tpu_info().vmem_capacity_bytes
    except Exception:
        vmem_bytes = None
    if vmem_bytes is not None and vmem_bytes >= 100 * (1 << 20):
        # v5e / v6e: 128 MiB VMEM -> big streamed blocks, deeper pipeline.
        return 8 * (1 << 20), 64 * (1 << 20)
    # v7x (64 MiB physical VMEM) or unknown backend: stay conservative.
    return 4 * (1 << 20), 48 * (1 << 20)


def _neural_aug_kernel(*refs, tr, inv_hw, with_noise):
    """One grid step processes a dense lane-aligned (TR, HW_pad) row block.

    coef_ref is the full (R_pad, 3) per-row table [scale, mean_coef, noise_std],
    VMEM-resident for the whole kernel.  Selection masks and the
    brightness/contrast magnitudes are already folded, so each block is:
        out = clip(scale*x + mean_coef*mean_spatial(x) + noise_std*noise, 0, 1)
    """
    if with_noise:
        _nblk_ref, x_ref, coef_ref, noise_ref, o_ref = refs
    else:
        x_ref, coef_ref, o_ref = refs

    row0 = pl.program_id(0) * tr
    coefs = coef_ref[pl.ds(row0, tr), :]            # (TR, 3), no per-step DMA
    scale = coefs[:, 0:1]
    mean_coef = coefs[:, 1:2]

    x = x_ref[...].astype(jnp.float32)              # (TR, HW_pad)
    # Columns beyond the true HW are zero-padded, so the row sum is exact;
    # divide by the true pixel count (static), not the padded lane width.
    row_mean = jnp.sum(x, axis=-1, keepdims=True) * inv_hw

    y = scale * x + mean_coef * row_mean
    if with_noise:
        noise_std = coefs[:, 2:3]
        y = y + noise_std * noise_ref[...].astype(jnp.float32)

    o_ref[...] = jnp.clip(y, 0.0, 1.0).astype(o_ref.dtype)


def neural_augmentor_forward(x_nchw, key,
                             brightness=1.2, contrast=0.8, noise_var=0.05):
    """Sample selection + magnitude folding in JAX; hot path in Pallas."""
    B, C, H, W = x_nchw.shape
    HW = H * W
    R = B * C
    n_aug = max(1, B // 2)
    with_noise = float(noise_var) != 0.0

    k_b, k_c, k_n, k_noise = jax.random.split(key, 4)

    def sel_mask(k):
        ids = jax.random.permutation(k, B)[:n_aug]
        return jnp.zeros((B,), jnp.float32).at[ids].set(1.0)

    mask_b, mask_c, mask_n = sel_mask(k_b), sel_mask(k_c), sel_mask(k_n)

    # Per-sample magnitudes; identity for unselected samples.
    bmag = jnp.where(mask_b > 0, brightness, 1.0).astype(jnp.float32)   # (B,)
    cmag = jnp.where(mask_c > 0, contrast, 1.0).astype(jnp.float32)     # (B,)
    nstd = jnp.where(mask_n > 0, noise_var, 0.0).astype(jnp.float32)    # (B,)

    # brightness followed by contrast folds into one per-sample affine:
    #   out = scale*x + mean_coef*mean(x)    (they commute, since mean(b*x)=b*mean(x))
    scale = bmag * cmag
    mean_coef = bmag * (1.0 - cmag)
    coef = jnp.repeat(jnp.stack([scale, mean_coef, nstd], axis=-1), C, axis=0)  # (R, 3)

    # Lane-dense layout: pad HW to a multiple of 128 lanes, rows to a multiple of 8.
    HW_pad = _round_up(HW, 128)
    R_pad = _round_up(R, 8)
    x2d = x_nchw.reshape(R, HW)
    if HW_pad != HW:
        x2d = jnp.pad(x2d, ((0, 0), (0, HW_pad - HW)))
    if R_pad != R:
        x2d = jnp.pad(x2d, ((0, R_pad - R), (0, 0)))
        coef = jnp.concatenate(
            [coef, jnp.tile(jnp.array([[1.0, 0.0, 0.0]], jnp.float32),
                            (R_pad - R, 1))], axis=0)

    # Generation-aware tiling: biggest streamed block within budget, but keep
    # >= 2 (ideally >= 4) grid steps so megacore + double-buffering engage.
    max_tile_bytes, vmem_limit = _tpu_memory_budget()
    itemsize = jnp.dtype(x2d.dtype).itemsize
    bytes_per_row = HW_pad * itemsize
    n_streams = 3 if with_noise else 2
    if 8 * bytes_per_row * 2 * n_streams > vmem_limit:
        # TODO(synk): tile the HW axis (two-pass spatial mean) for very large
        # images instead of failing; not needed for typical image sizes.
        raise ValueError("Image too large for single-axis row tiling.")
    tr_cap = max(8, (max_tile_bytes // bytes_per_row) // 8 * 8)
    target_steps = 4 if R_pad >= 32 else (2 if R_pad >= 16 else 1)
    TR = min(tr_cap, R_pad, max(8, (R_pad // target_steps) // 8 * 8))
    while R_pad % TR != 0:
        TR -= 8
    num_blocks = R_pad // TR

    kernel = functools.partial(_neural_aug_kernel, tr=TR, inv_hw=1.0 / HW,
                               with_noise=with_noise)
    out_shape = jax.ShapeDtypeStruct((R_pad, HW_pad), x2d.dtype)
    cparams = pltpu.CompilerParams(
        dimension_semantics=("parallel",),
        vmem_limit_bytes=vmem_limit,
    )
    bytes_accessed = 2 * R_pad * HW_pad * itemsize + coef.size * 4
    if with_noise:
        bytes_accessed += R_pad * HW_pad * 2   # bf16 noise read stream
    cost = pl.CostEstimate(
        flops=(10 if with_noise else 8) * R_pad * HW_pad,
        transcendentals=0,
        bytes_accessed=bytes_accessed,
    )

    if with_noise:
        # TODO(synk): on real TPU hardware this stream could be generated
        # in-kernel (pltpu.prng_seed + stateful_normal) to remove the HBM
        # read; kept as a streamed bf16 input because those primitives have
        # no CPU/interpret lowering (previous run crashed there).
        noise = jax.random.normal(k_noise, (R_pad, HW_pad), dtype=jnp.bfloat16)

        # Per-block DMA gating: blocks whose rows all have noise_std == 0 map
        # to noise block 0; identical consecutive block indices skip the
        # re-fetch, so clean row blocks do not pay the noise read stream.
        row_has_noise = jnp.pad(jnp.repeat(nstd, C) > 0.0, (0, R_pad - R))
        block_has_noise = row_has_noise.reshape(num_blocks, TR).any(axis=1)
        noise_blk = jnp.where(block_has_noise,
                              jnp.arange(num_blocks, dtype=jnp.int32),
                              jnp.int32(0))

        grid_spec = pltpu.PrefetchScalarGridSpec(
            num_scalar_prefetch=1,                       # noise block map -> SMEM
            grid=(num_blocks,),
            in_specs=[
                pl.BlockSpec((TR, HW_pad), lambda r, nblk: (r, 0)),        # x rows
                pl.BlockSpec((R_pad, 3), lambda r, nblk: (0, 0)),          # resident coefs
                pl.BlockSpec((TR, HW_pad), lambda r, nblk: (nblk[r], 0)),  # gated noise
            ],
            out_specs=pl.BlockSpec((TR, HW_pad), lambda r, nblk: (r, 0)),
        )
        out2d = pl.pallas_call(
            kernel, out_shape=out_shape, grid_spec=grid_spec,
            compiler_params=cparams, cost_estimate=cost,
        )(noise_blk, x2d, coef, noise)
    else:
        grid_spec = pltpu.PrefetchScalarGridSpec(
            num_scalar_prefetch=0,
            grid=(num_blocks,),
            in_specs=[
                pl.BlockSpec((TR, HW_pad), lambda r: (r, 0)),   # x rows
                pl.BlockSpec((R_pad, 3), lambda r: (0, 0)),     # resident coefs
            ],
            out_specs=pl.BlockSpec((TR, HW_pad), lambda r: (r, 0)),
        )
        out2d = pl.pallas_call(
            kernel, out_shape=out_shape, grid_spec=grid_spec,
            compiler_params=cparams, cost_estimate=cost,
        )(x2d, coef)

    out = out2d[:R, :HW].reshape(B, C, H, W)
    return out, (bmag, cmag, nstd)


def reference_forward(x_nchw, bmag, cmag):
    """Pure-JAX reference of the noise-free path (brightness -> contrast -> clip)."""
    B, C, H, W = x_nchw.shape
    x = x_nchw.reshape(B, C, H * W).astype(jnp.float32)
    x = x * bmag.reshape(B, 1, 1)
    mean = jnp.mean(x, axis=-1, keepdims=True)
    x = (x - mean) * cmag.reshape(B, 1, 1) + mean
    return jnp.clip(x, 0.0, 1.0).reshape(B, C, H, W)


if __name__ == "__main__":
    key = jax.random.PRNGKey(0)
    k_x, k_fwd = jax.random.split(key)

    B, C, H, W = 2, 4, 16, 16
    # Images in [0, 1], matching the module's expected input range.
    x = jax.random.uniform(k_x, (B, C, H, W), dtype=jnp.float32)

    # Run 1: noise disabled -> must match the analytic reference.
    out_det, (bmag, cmag, _) = neural_augmentor_forward(x, k_fwd, noise_var=0.0)
    out_det = jax.block_until_ready(out_det)
    ref_det = reference_forward(x, bmag, cmag)
    assert out_det.shape == (B, C, H, W)
    assert jnp.allclose(out_det, ref_det, atol=1e-5, rtol=1e-5), \
        "deterministic path mismatch vs reference"

    # Run 2: full path with the Gaussian-noise augmentation (same selection key).
    out, (_, _, nstd) = neural_augmentor_forward(x, k_fwd, noise_var=0.05)
    out = jax.block_until_ready(out)
    assert out.shape == (B, C, H, W)
    assert bool(jnp.all(jnp.isfinite(out)))
    assert float(out.min()) >= 0.0 and float(out.max()) <= 1.0

    # Samples not selected for the noise augmentation are untouched by it.
    untouched = (nstd == 0.0).reshape(B, 1, 1, 1)
    assert bool(jnp.all(jnp.where(untouched, out == out_det, True)))
    # At least one selected sample actually received noise.
    touched = nstd > 0.0
    max_diff = jnp.abs(out - out_det).reshape(B, -1).max(axis=-1)
    assert bool(jnp.any(jnp.where(touched, max_diff > 0.0, False)))

    # TODO(synk): random.shuffle of the aug_fns order and the UniformSampler
    # magnitude draws are instantiated deterministically (fixed order
    # brightness -> contrast -> noise, fixed magnitudes); torch.randperm
    # subset selection is reproduced with jax.random.permutation.
    print("KERNEL_OK")
</pallas_src>

<mosaic_0001>
module attributes {stable_mosaic.version = 11 : i64} {
  func.func @_neural_aug_kernel(%arg0: i32, %arg1: memref<8x256xf32, #tpu.memory_space<vmem>>, %arg2: memref<8x3xf32, #tpu.memory_space<vmem>>, %arg3: memref<8x256xf32, #tpu.memory_space<vmem>>) attributes {dimension_semantics = [#tpu.dimension_semantics<parallel>], iteration_bounds = array<i64: 1>, scalar_prefetch = 0 : i64, scratch_operands = 0 : i64, tpu.core_type = #tpu.core_type<tc>, window_params = [{transform_indices = @transform_0, window_bounds = array<i64: 8, 256>}, {pipeline_mode = #tpu.pipeline_mode<synchronous>, transform_indices = @transform_1, window_bounds = array<i64: 8, 3>}, {transform_indices = @transform_2, window_bounds = array<i64: 8, 256>}]} {
    %c8_i32 = arith.constant 8 : i32
    %0 = arith.muli %arg0, %c8_i32 : i32
    %1 = arith.index_cast %0 : i32 to index
    %c0 = arith.constant 0 : index
    %2 = vector.load %arg2[%1, %c0] : memref<8x3xf32, #tpu.memory_space<vmem>>, vector<8x3xf32>
    %3 = vector.extract_strided_slice %2 {offsets = [0, 0], sizes = [8, 1], strides = [1, 1]} : vector<8x3xf32> to vector<8x1xf32>
    %4 = vector.extract_strided_slice %2 {offsets = [0, 1], sizes = [8, 1], strides = [1, 1]} : vector<8x3xf32> to vector<8x1xf32>
    %c0_0 = arith.constant 0 : index
    %c0_1 = arith.constant 0 : index
    %5 = vector.load %arg1[%c0_0, %c0_1] : memref<8x256xf32, #tpu.memory_space<vmem>>, vector<8x256xf32>
    %cst = arith.constant dense<0.000000e+00> : vector<8xf32>
    %6 = vector.multi_reduction <add>, %5, %cst [1] : vector<8x256xf32> to vector<8xf32>
    %7 = vector.shape_cast %6 : vector<8xf32> to vector<8x1xf32>
    %cst_2 = arith.constant 3.906250e-03 : f32
    %8 = vector.broadcast %cst_2 : f32 to vector<8x1xf32>
    %9 = arith.mulf %7, %8 : vector<8x1xf32>
    %10 = vector.broadcast %3 : vector<8x1xf32> to vector<8x256xf32>
    %11 = arith.mulf %10, %5 : vector<8x256xf32>
    %12 = arith.mulf %4, %9 : vector<8x1xf32>
    %13 = vector.broadcast %12 : vector<8x1xf32> to vector<8x256xf32>
    %14 = arith.addf %11, %13 : vector<8x256xf32>
    %cst_3 = arith.constant 0.000000e+00 : f32
    %cst_4 = arith.constant 1.000000e+00 : f32
    %15 = vector.broadcast %cst_3 : f32 to vector<8x256xf32>
    %16 = arith.maximumf %15, %14 : vector<8x256xf32>
    %17 = vector.broadcast %cst_4 : f32 to vector<8x256xf32>
    %18 = arith.minimumf %17, %16 : vector<8x256xf32>
    %c0_5 = arith.constant 0 : index
    %c0_6 = arith.constant 0 : index
    %19 = vector.load %arg3[%c0_5, %c0_6] : memref<8x256xf32, #tpu.memory_space<vmem>>, vector<8x256xf32>
    tpu.vector_store %arg3[%c0_5, %c0_6], %18 {strides = array<i32>} : memref<8x256xf32, #tpu.memory_space<vmem>>, vector<8x256xf32>,
    return
  }
  func.func @transform_0(%arg0: i32) -> (i32, i32) {
    %c0_i32 = arith.constant 0 : i32
    %c0_i32_0 = arith.constant 0 : i32
    return %arg0, %c0_i32 : i32, i32
  }
  func.func @transform_1(%arg0: i32) -> (i32, i32) {
    %c0_i32 = arith.constant 0 : i32
    %c0_i32_0 = arith.constant 0 : i32
    %c0_i32_1 = arith.constant 0 : i32
    return %c0_i32, %c0_i32_0 : i32, i32
  }
  func.func @transform_2(%arg0: i32) -> (i32, i32) {
    %c0_i32 = arith.constant 0 : i32
    %c0_i32_0 = arith.constant 0 : i32
    return %arg0, %c0_i32 : i32, i32
  }
}

</mosaic_0001>

<bundles_post_ra>
// kernel: tpu_custom_call.1
= control target key start
LH: loop header
LB: loop body
LE: loop exit
PB: predicated region body
PF: predicated region fallthrough
CT: control target
= control target key end

     0   :  { %7 = vsyncpa [#allocation3], 0  ;;  %s160_s0 = inlined_call_operand.hbm [shape: f32[8,256], index: 0, kind: input, shape index: {}]   ;;  %s161_s1 = inlined_call_operand.vmem [shape: f32[8,3], index: 1, kind: input, shape index: {}]   ;;  %s162_s2 = inlined_call_operand.hbm [shape: f32[8,256], index: 2, kind: output, shape index: {}]  }
   0x1   :  { %8 = vsyncpa [#allocation4], 0  ;;  %s14_s11 = sshll.u32 %s160_s0, 4  ;;  %s132_s12 = smov [#allocation2]   ;;  %s15_s11 = int_to_ptr.hbm [resolvable:$true] %s14_s11 }
   0x2   :  { %s16_s13 = sshll.u32 %s132_s12, 4  ;;  %s17_s13 = int_to_ptr.vmem [resolvable:$true] %s16_s13 }
   0x3   :  { %19 = dma.hbm_to_vmem [thread:$0]  %s15_s11, 256, %s17_s13, [#allocation3]  }
   0x4   :  { %128 = dma.done.wait [#allocation3], 256  }
   0x5   :  { %129 = vsyncadd [#allocation3], 4294967040  ;;  %v29_v0 = vld [vmem:[#allocation2] sm:$0xff]  ;;  %v30_v1 = vld [vmem:[#allocation2 + $0x8] sm:$0xff]  ;;  %v133_v4 = vmov 0   ;;  %v134_v5 = vmov 1  }
   0x6   :  { %v31_v2 = vadd.f32 %v30_v1, %v29_v0  ;;  %v28_v3 = vld [vmem:[%s161_s1] sm:$0xff]  ;;  %77 = vset.pattern.permute.xlu0 %v133_v4  ;;  %78 = vset.pattern.permute.xlu1 %v134_v5  ;;  %s135_s0 = smov [#allocation5]   ;;  %s63_s18 = sshll.u32 %s162_s2, 4  ;;  %s64_s18 = int_to_ptr.hbm [resolvable:$true] %s63_s18 }
   0x7   :  { %s61_s1 = sshll.u32 %s135_s0, 4  ;;  %s62_s1 = int_to_ptr.vmem [resolvable:$true] %s61_s1 }
   0x8   :  { %32 = vadd.xlane.f32.xlu0 %v31_v2 }
  0x1c   :  { %37 = vperm.xlu0 %77, %v28_v3  }
  0x24   :  { %79 = vset.pattern.permute.xlu0 %v134_v5 }
  0x7b   :  { %v33_v6 = vpop.xlane.xlu0 %32 }
  0x7c   :  { %v34_v7 = vmul.f32 0.00390625, %v33_v6 }
  0x7e   :  { %v42_v8 = vmul.f32 %v34_v7, %v28_v3 }
  0x80   :  { %45 = vperm.xlu1 %78, %v42_v8  }
  0x8e   :  { %v38_v9 = vpop.permute.xlu0 %37 }
  0x8f   :  { %v40_v10 = vmul.f32 %v38_v9, %v29_v0  ;;  %v41_v11 = vmul.f32 %v38_v9, %v30_v1 }
  0xf2   :  { %v46_v12 = vpop.permute.xlu1 %45 }
  0xf3   :  { %v48_v13 = vadd.f32 %v46_v12, %v40_v10  ;;  %v49_v14 = vadd.f32 %v46_v12, %v41_v11 }
  0xf5   :  { %v50_v15 = vmax.f32 %v48_v13, 0.0  ;;  %v51_v16 = vmax.f32 %v49_v14, 0.0 }
  0xf7   :  { %v52_v17 = vmin.f32 %v50_v15, 1.0  ;;  %v53_v18 = vmin.f32 %v51_v16, 1.0 }
  0xf9   :  { %54 = vst [vmem:[#allocation5] sm:$0xff] %v52_v17 }
  0xfa   :  { %55 = vst [vmem:[#allocation5 + $0x8] sm:$0xff] %v53_v18 }
  0xfb   :  { %66 = dma.vmem_to_hbm [thread:$0]  %s62_s1, 256, %s64_s18, [#allocation4]  }
  0xfc   :  { %130 = dma.done.wait [#allocation4], 256  }
  0xfd   :  { %131 = vsyncadd [#allocation4], 4294967040 }
  0xfe   :  { %71 = vsyncpa [#allocation3], 1 }
  0xff   :  { %72 = vsyncpa [#allocation4], 1 }

</bundles_post_ra>
